<compile_context>
chip_gen: v6e
topology: v6e:2x2x1
jax: 0.10.0
libtpu: 0.0.40
codegen_flags: <defaults>
</compile_context>

<pallas_src>
import jax
import jax.numpy as jnp
from jax.experimental import pallas as pl
from jax.experimental.pallas import tpu as pltpu

OBS_DIM = 22
ACT_DIM = 4
IN_DIM = 2 * OBS_DIM + ACT_DIM      # 48  (multiple of 8 -> no pad needed)
HIDDEN = 64                         # args.hiddenSize (unspecified in spec)
OUT_DIM = 1

LANE = 128
SUBLANE = 8

HID_PAD = LANE                      # 64 -> 128 so fc1/fc2 tiles are lane-dense

# Tiling policy:
#   B <= SINGLE_BLOCK_MAX : one block == full array, no padding / slicing,
#                           exactly one device op.
#   B  > SINGLE_BLOCK_MAX : tile the batch with >= 2 grid steps (v7x megacore
#                           sharding), tiles capped at MAX_TB rows.
SINGLE_BLOCK_MAX = 1024
MAX_TB = 4096                       # ~12 MB of double-buffered f32 VMEM


def _mlp_kernel(x_ref, w1_ref, b1_ref, w2_ref, b2_ref, w3_ref, b3_ref, out_ref):
    """Fused fc1 -> ReLU -> fc2 -> ReLU -> fc3 on one batch tile.

    x_ref   : (TB, 48)    unpadded input tile
    w1_ref  : (48, 128)   fc1 weight transposed, hidden dim zero-padded
    b1_ref  : (1, 128)
    w2_ref  : (128, 128)
    b2_ref  : (1, 128)
    w3_ref  : (1, 128)    fc3 weight row (only first 64 lanes are real)
    b3_ref  : (1, 1)
    out_ref : (TB, 1)
    """
    h1 = jnp.dot(x_ref[...], w1_ref[...], preferred_element_type=jnp.float32)
    h1 = jnp.maximum(h1 + b1_ref[...], 0.0)
    h2 = jnp.dot(h1, w2_ref[...], preferred_element_type=jnp.float32)
    h2 = jnp.maximum(h2 + b2_ref[...], 0.0)
    # fc3 has a single output unit: VPU multiply + XLU lane reduction instead
    # of a 127/128-zero-column MXU pass; output stays (TB, 1) so HBM writes
    # are 4 B/row instead of 512 B/row.
    out_ref[...] = (
        jnp.sum(h2 * w3_ref[...], axis=-1, keepdims=True) + b3_ref[...]
    )


def _pad2(a, rows, cols):
    return jnp.pad(a, ((0, rows - a.shape[0]), (0, cols - a.shape[1])))


def prepare_params(params):
    """Pre-transpose + pad weights once (not per forward call).

    Padding rows/cols are zero, so padded hidden lanes contribute nothing and
    padded bias lanes stay zero through the ReLUs.
    """
    return {
        "w1": _pad2(params["w1"].T, IN_DIM, HID_PAD),            # (48,128)
        "b1": _pad2(params["b1"].reshape(1, -1), 1, HID_PAD),    # (1,128)
        "w2": _pad2(params["w2"].T, HID_PAD, HID_PAD),           # (128,128)
        "b2": _pad2(params["b2"].reshape(1, -1), 1, HID_PAD),    # (1,128)
        "w3": _pad2(params["w3"], OUT_DIM, HID_PAD),             # (1,128) row
        "b3": params["b3"].reshape(1, 1),                        # (1,1)
    }


@jax.jit
def rrd_forward(x, padded):
    """x: (B, IN_DIM) float32 -> (B, 1) float32.  Single fused pallas_call."""
    B = x.shape[0]

    if B <= SINGLE_BLOCK_MAX:
        # Block == full array in both trailing dims: always a legal BlockSpec,
        # no row padding and no post-slice needed.
        tb = B
    else:
        # At least 2 grid steps so the "parallel" axis shards across both
        # TensorCores on v7x; rows per tile a multiple of 8, capped at MAX_TB.
        half = -(-B // 2)
        tb = min(MAX_TB, ((half + SUBLANE - 1) // SUBLANE) * SUBLANE)

    grid = (pl.cdiv(B, tb),)
    const_spec = lambda r, c: pl.BlockSpec((r, c), lambda i: (0, 0))

    out = pl.pallas_call(
        _mlp_kernel,
        out_shape=jax.ShapeDtypeStruct((B, OUT_DIM), jnp.float32),
        grid=grid,
        in_specs=[
            pl.BlockSpec((tb, IN_DIM), lambda i: (i, 0)),   # x tile (48 lanes)
            const_spec(IN_DIM, HID_PAD),                    # w1
            const_spec(1, HID_PAD),                         # b1
            const_spec(HID_PAD, HID_PAD),                   # w2
            const_spec(1, HID_PAD),                         # b2
            const_spec(1, HID_PAD),                         # w3 row
            const_spec(1, 1),                               # b3
        ],
        out_specs=pl.BlockSpec((tb, OUT_DIM), lambda i: (i, 0)),
        compiler_params=pltpu.CompilerParams(
            dimension_semantics=("parallel",),
            # Safe on all generations (<= default on v6e/v7x, raises v5e's
            # 16 MiB scoped default so MAX_TB tiles fit when B is large).
            vmem_limit_bytes=32 * 1024 * 1024),
    )(x, padded["w1"], padded["b1"], padded["w2"], padded["b2"],
      padded["w3"], padded["b3"])

    return out


def init_params(key):
    """Deterministic init mimicking layer_init: xavier_uniform weights, bias=0.1."""
    def xavier(k, shape):
        fan_out, fan_in = shape
        bound = jnp.sqrt(6.0 / (fan_in + fan_out)).astype(jnp.float32)
        return jax.random.uniform(k, shape, jnp.float32, minval=-bound,
                                  maxval=bound)

    k1, k2, k3 = jax.random.split(key, 3)
    return {
        "w1": xavier(k1, (HIDDEN, IN_DIM)),
        "b1": jnp.full((HIDDEN,), 0.1, jnp.float32),
        "w2": xavier(k2, (HIDDEN, HIDDEN)),
        "b2": jnp.full((HIDDEN,), 0.1, jnp.float32),
        "w3": xavier(k3, (OUT_DIM, HIDDEN)),
        "b3": jnp.full((OUT_DIM,), 0.1, jnp.float32),
    }


def reference_forward(x, params):
    """Pure-JAX reference matching the PyTorch RRDModel forward."""
    h1 = jnp.maximum(x @ params["w1"].T + params["b1"], 0.0)
    h2 = jnp.maximum(h1 @ params["w2"].T + params["b2"], 0.0)
    return h2 @ params["w3"].T + params["b3"]


if __name__ == "__main__":
    key = jax.random.PRNGKey(0)
    k_param, k_x = jax.random.split(key)

    params = init_params(k_param)
    padded = prepare_params(params)     # one-time weight prep

    BATCH = 2
    x = jax.random.normal(k_x, (BATCH, IN_DIM), jnp.float32)

    out = rrd_forward(x, padded)
    out = jax.block_until_ready(out)

    ref = reference_forward(x, params)
    assert out.shape == (BATCH, OUT_DIM), out.shape
    assert jnp.allclose(out, ref, atol=1e-4, rtol=1e-4), "mismatch vs reference"

    print("KERNEL_OK")
</pallas_src>

<mosaic_0001>
module attributes {stable_mosaic.version = 11 : i64} {
  func.func @_mlp_kernel(%arg0: i32, %arg1: memref<2x48xf32, #tpu.memory_space<vmem>>, %arg2: memref<48x128xf32, #tpu.memory_space<vmem>>, %arg3: memref<1x128xf32, #tpu.memory_space<vmem>>, %arg4: memref<128x128xf32, #tpu.memory_space<vmem>>, %arg5: memref<1x128xf32, #tpu.memory_space<vmem>>, %arg6: memref<1x128xf32, #tpu.memory_space<vmem>>, %arg7: memref<1x1xf32, #tpu.memory_space<vmem>>, %arg8: memref<2x1xf32, #tpu.memory_space<vmem>>) attributes {dimension_semantics = [#tpu.dimension_semantics<parallel>], iteration_bounds = array<i64: 1>, scalar_prefetch = 0 : i64, scratch_operands = 0 : i64, tpu.core_type = #tpu.core_type<tc>, window_params = [{transform_indices = @transform_0, window_bounds = array<i64: 2, 48>}, {pipeline_mode = #tpu.pipeline_mode<synchronous>, transform_indices = @transform_1, window_bounds = array<i64: 48, 128>}, {pipeline_mode = #tpu.pipeline_mode<synchronous>, transform_indices = @transform_2, window_bounds = array<i64: 1, 128>}, {pipeline_mode = #tpu.pipeline_mode<synchronous>, transform_indices = @transform_3, window_bounds = array<i64: 128, 128>}, {pipeline_mode = #tpu.pipeline_mode<synchronous>, transform_indices = @transform_4, window_bounds = array<i64: 1, 128>}, {pipeline_mode = #tpu.pipeline_mode<synchronous>, transform_indices = @transform_5, window_bounds = array<i64: 1, 128>}, {pipeline_mode = #tpu.pipeline_mode<synchronous>, transform_indices = @transform_6, window_bounds = array<i64: 1, 1>}, {transform_indices = @transform_7, window_bounds = array<i64: 2, 1>}]} {
    %c0 = arith.constant 0 : index
    %c0_0 = arith.constant 0 : index
    %0 = vector.load %arg1[%c0, %c0_0] : memref<2x48xf32, #tpu.memory_space<vmem>>, vector<2x48xf32>
    %c0_1 = arith.constant 0 : index
    %c0_2 = arith.constant 0 : index
    %1 = vector.load %arg2[%c0_1, %c0_2] : memref<48x128xf32, #tpu.memory_space<vmem>>, vector<48x128xf32>
    %cst = arith.constant dense<0.000000e+00> : vector<2x128xf32>
    %2 = tpu.matmul %0, %1, %cst {dimension_numbers = #tpu.dot_dimension_numbers<[1], [0], [0], [1], [0, 0, 1, 1], [], []>} : vector<2x48xf32>, vector<48x128xf32>, vector<2x128xf32> -> vector<2x128xf32>
    %c0_3 = arith.constant 0 : index
    %c0_4 = arith.constant 0 : index
    %3 = vector.load %arg3[%c0_3, %c0_4] : memref<1x128xf32, #tpu.memory_space<vmem>>, vector<1x128xf32>
    %4 = vector.broadcast %3 : vector<1x128xf32> to vector<2x128xf32>
    %5 = arith.addf %2, %4 : vector<2x128xf32>
    %cst_5 = arith.constant 0.000000e+00 : f32
    %6 = vector.broadcast %cst_5 : f32 to vector<2x128xf32>
    %7 = arith.maximumf %5, %6 : vector<2x128xf32>
    %c0_6 = arith.constant 0 : index
    %c0_7 = arith.constant 0 : index
    %8 = vector.load %arg4[%c0_6, %c0_7] : memref<128x128xf32, #tpu.memory_space<vmem>>, vector<128x128xf32>
    %cst_8 = arith.constant dense<0.000000e+00> : vector<2x128xf32>
    %9 = tpu.matmul %7, %8, %cst_8 {dimension_numbers = #tpu.dot_dimension_numbers<[1], [0], [0], [1], [0, 0, 1, 1], [], []>} : vector<2x128xf32>, vector<128x128xf32>, vector<2x128xf32> -> vector<2x128xf32>
    %c0_9 = arith.constant 0 : index
    %c0_10 = arith.constant 0 : index
    %10 = vector.load %arg5[%c0_9, %c0_10] : memref<1x128xf32, #tpu.memory_space<vmem>>, vector<1x128xf32>
    %11 = vector.broadcast %10 : vector<1x128xf32> to vector<2x128xf32>
    %12 = arith.addf %9, %11 : vector<2x128xf32>
    %cst_11 = arith.constant 0.000000e+00 : f32
    %13 = vector.broadcast %cst_11 : f32 to vector<2x128xf32>
    %14 = arith.maximumf %12, %13 : vector<2x128xf32>
    %c0_12 = arith.constant 0 : index
    %c0_13 = arith.constant 0 : index
    %15 = vector.load %arg6[%c0_12, %c0_13] : memref<1x128xf32, #tpu.memory_space<vmem>>, vector<1x128xf32>
    %16 = vector.broadcast %15 : vector<1x128xf32> to vector<2x128xf32>
    %17 = arith.mulf %14, %16 : vector<2x128xf32>
    %cst_14 = arith.constant dense<0.000000e+00> : vector<2xf32>
    %18 = vector.multi_reduction <add>, %17, %cst_14 [1] : vector<2x128xf32> to vector<2xf32>
    %19 = vector.shape_cast %18 : vector<2xf32> to vector<2x1xf32>
    %c0_15 = arith.constant 0 : index
    %c0_16 = arith.constant 0 : index
    %20 = vector.load %arg7[%c0_15, %c0_16] : memref<1x1xf32, #tpu.memory_space<vmem>>, vector<1x1xf32>
    %21 = vector.broadcast %20 : vector<1x1xf32> to vector<2x1xf32>
    %22 = arith.addf %19, %21 : vector<2x1xf32>
    %c0_17 = arith.constant 0 : index
    %c0_18 = arith.constant 0 : index
    %23 = vector.load %arg8[%c0_17, %c0_18] : memref<2x1xf32, #tpu.memory_space<vmem>>, vector<2x1xf32>
    tpu.vector_store %arg8[%c0_17, %c0_18], %22 {strides = array<i32>} : memref<2x1xf32, #tpu.memory_space<vmem>>, vector<2x1xf32>,
    return
  }
  func.func @transform_0(%arg0: i32) -> (i32, i32) {
    %c0_i32 = arith.constant 0 : i32
    %c0_i32_0 = arith.constant 0 : i32
    return %arg0, %c0_i32 : i32, i32
  }
  func.func @transform_1(%arg0: i32) -> (i32, i32) {
    %c0_i32 = arith.constant 0 : i32
    %c0_i32_0 = arith.constant 0 : i32
    %c0_i32_1 = arith.constant 0 : i32
    return %c0_i32, %c0_i32_0 : i32, i32
  }
  func.func @transform_2(%arg0: i32) -> (i32, i32) {
    %c0_i32 = arith.constant 0 : i32
    %c0_i32_0 = arith.constant 0 : i32
    %c0_i32_1 = arith.constant 0 : i32
    return %c0_i32, %c0_i32_0 : i32, i32
  }
  func.func @transform_3(%arg0: i32) -> (i32, i32) {
    %c0_i32 = arith.constant 0 : i32
    %c0_i32_0 = arith.constant 0 : i32
    %c0_i32_1 = arith.constant 0 : i32
    return %c0_i32, %c0_i32_0 : i32, i32
  }
  func.func @transform_4(%arg0: i32) -> (i32, i32) {
    %c0_i32 = arith.constant 0 : i32
    %c0_i32_0 = arith.constant 0 : i32
    %c0_i32_1 = arith.constant 0 : i32
    return %c0_i32, %c0_i32_0 : i32, i32
  }
  func.func @transform_5(%arg0: i32) -> (i32, i32) {
    %c0_i32 = arith.constant 0 : i32
    %c0_i32_0 = arith.constant 0 : i32
    %c0_i32_1 = arith.constant 0 : i32
    return %c0_i32, %c0_i32_0 : i32, i32
  }
  func.func @transform_6(%arg0: i32) -> (i32, i32) {
    %c0_i32 = arith.constant 0 : i32
    %c0_i32_0 = arith.constant 0 : i32
    %c0_i32_1 = arith.constant 0 : i32
    return %c0_i32, %c0_i32_0 : i32, i32
  }
  func.func @transform_7(%arg0: i32) -> (i32, i32) {
    %c0_i32 = arith.constant 0 : i32
    %c0_i32_0 = arith.constant 0 : i32
    return %arg0, %c0_i32 : i32, i32
  }
}

</mosaic_0001>

<bundles_post_ra>
// kernel: rrd_forward.1
= control target key start
LH: loop header
LB: loop body
LE: loop exit
PB: predicated region body
PF: predicated region fallthrough
CT: control target
= control target key end

     0   :  { %s490_s0 = inlined_call_operand.vmem [shape: f32[2,48], index: 0, kind: input, shape index: {}]   ;;  %s491_s1 = inlined_call_operand.hbm [shape: f32[48,128], index: 1, kind: input, shape index: {}]   ;;  %s492_s2 = inlined_call_operand.vmem [shape: f32[1,128], index: 2, kind: input, shape index: {}]   ;;  %s493_s3 = inlined_call_operand.hbm [shape: f32[128,128], index: 3, kind: input, shape index: {}]   ;;  %s494_s4 = inlined_call_operand.vmem [shape: f32[1,128], index: 4, kind: input, shape index: {}]   ;;  %s495_s5 = inlined_call_operand.vmem [shape: f32[1,128], index: 5, kind: input, shape index: {}]   ;;  %s496_s6 = inlined_call_operand.<no memory space> [shape: f32[1,1], index: 6, kind: input, shape index: {}]   ;;  %s497_s7 = inlined_call_operand.vmem [shape: f32[2,1], index: 7, kind: output, shape index: {}]  }
   0x1   :  { %v12_v0 = vstv %s496_s6 }
   0x2   :  { %13 = vst [vmem:[#allocation2] sm:$0x1] %v12_v0 }
   0x3   :  { %14 = vsyncpa [#allocation4], 0 }
   0x4   :  { %15 = vsyncpa [#allocation6], 0  ;;  %s396_s26 = smov [#allocation3]  }
   0x5   :  { %s23_s27 = sshll.u32 %s396_s26, 4  ;;  %s24_s27 = int_to_ptr.vmem [resolvable:$true] %s23_s27 }
   0x6   :  { %s360_s28 = scalar_lea.vmem %s24_s27, 768  ;;  %p365_p1 = scmp.lt.s32.totalorder %s24_s27, %s24_s27 }
   0x7   :  { %p361_p0 = scmp.ne.s32.totalorder %s24_s27, %s360_s28  ;;  %p366_p2 = scmp.lt.s32.totalorder %s360_s28, %s360_s28 }
   0x9   :  { %p367_p3 = por %p366_p2, %p365_p1 }
   0xb   :  { %p368_p4 = pnand %p367_p3, %p361_p0 }
   0xd   :  { %371 = shalt.err (!%p368_p4)
}
   0xe   :  { %s397_s29 = smov 128   ;;  %s398_s30 = smov 8  }
   0xf   :  { %29 = dma.hbm_to_vmem [thread:$0]  %s491_s1, 768, %s24_s27, [#allocation4], %s397_s29, %s397_s29, %s398_s30  }
  0x10   :  { %s399_s6 = smov [#allocation5]  }
  0x11   :  { %s37_s10 = sshll.u32 %s399_s6, 4  ;;  %s38_s10 = int_to_ptr.vmem [resolvable:$true] %s37_s10 }
  0x12   :  { %s380_s11 = scalar_lea.vmem %s38_s10, 2048  ;;  %p385_p6 = scmp.lt.s32.totalorder %s38_s10, %s38_s10 }
  0x13   :  { %p381_p5 = scmp.ne.s32.totalorder %s38_s10, %s380_s11  ;;  %p386_p7 = scmp.lt.s32.totalorder %s380_s11, %s380_s11 }
  0x15   :  { %p387_p8 = por %p386_p7, %p385_p6 }
  0x17   :  { %p388_p9 = pnand %p387_p8, %p381_p5 }
  0x19   :  { %391 = shalt.err (!%p388_p9)
}
  0x1a   :  { %43 = dma.hbm_to_vmem [thread:$0]  %s493_s3, 2048, %s38_s10, [#allocation6], %s397_s29, %s397_s29, %s398_s30  }
  0x1b   :  { %392 = dma.done.wait [#allocation4], 768  }
  0x1c   :  { %393 = vsyncadd [#allocation4], 4294966528 }
  0x1d   :  { %394 = dma.done.wait [#allocation6], 2048  }
  0x1e   :  { %395 = vsyncadd [#allocation6], 4294965248  ;;  %v400_v1 = vmov 0.0   ;;  %vm401_vm0 = vmmov 0   ;;  %v62_v2 = vld [vmem:[#allocation3 + $0x28] sm:$0xff]  ;;  %v61_v3 = vld [vmem:[#allocation3 + $0x20] sm:$0xff] }
  0x1f   :  { %296 = vmatprep.subr.mxu0 %v400_v1  ;;  %308 = vmatprep.mubr.msk.f32.mxu0 %vm401_vm0, %v400_v1  ;;  %v60_v4 = vld [vmem:[#allocation3 + $0x18] sm:$0xff]  ;;  %v160_v5 = vld [vmem:[#allocation5 + $0x78] sm:$0xff]  ;;  %v159_v6 = vld [vmem:[#allocation5 + $0x70] sm:$0xff]  ;;  %vm70_vm1 = vcmask 392192   ;;  %vm247_vm2 = vcmask 1041408   ;;  %vm259_vm3 = vcmask 1024  }
  0x20   :  { %311 = vmatprep.subr.mxu1 %v400_v1  ;;  %343 = vmatprep.mubr.msk.f32.mxu1 %vm401_vm0, %v400_v1  ;;  %v59_v7 = vld [vmem:[#allocation3 + $0x10] sm:$0xff]  ;;  %v158_v8 = vld [vmem:[#allocation5 + $0x68] sm:$0xff]  ;;  %v58_v9 = vld [vmem:[#allocation3 + $0x8] sm:$0xff] }
  0x21   :  { %297 = vmatpush3.msra.mxu0 %v62_v2  ;;  %312 = vmatpush3.msra.mxu1 %v160_v5  ;;  %v157_v10 = vld [vmem:[#allocation5 + $0x60] sm:$0xff]  ;;  %v57_v11 = vld [vmem:[#allocation3] sm:$0xff]  ;;  %v156_v12 = vld [vmem:[#allocation5 + $0x58] sm:$0xff] }
  0x22   :  { %298 = vmatprep.subr.mxu0 %v400_v1  ;;  %313 = vmatprep.subr.mxu1 %v400_v1  ;;  %v56_v13 = vld [vmem:[%s490_s0] sm:$0x3]  ;;  %v153_v16 = vld [vmem:[#allocation5 + $0x40] sm:$0xff]  ;;  %v152_v17 = vld [vmem:[#allocation5 + $0x38] sm:$0xff] }
  0x23   :  { %299 = vmatpush3.msra.mxu0 %v61_v3  ;;  %314 = vmatpush3.msra.mxu1 %v159_v6  ;;  %v155_v14 = vld [vmem:[#allocation5 + $0x50] sm:$0xff]  ;;  %v154_v15 = vld [vmem:[#allocation5 + $0x48] sm:$0xff]  ;;  %v149_v20 = vld [vmem:[#allocation5 + $0x20] sm:$0xff] }
  0x24   :  { %300 = vmatprep.subr.mxu0 %v400_v1  ;;  %315 = vmatprep.subr.mxu1 %v400_v1  ;;  %v151_v18 = vld [vmem:[#allocation5 + $0x30] sm:$0xff]  ;;  %v150_v19 = vld [vmem:[#allocation5 + $0x28] sm:$0xff]  ;;  %v148_v21 = vld [vmem:[#allocation5 + $0x18] sm:$0xff] }
  0x25   :  { %301 = vmatpush3.msra.mxu0 %v60_v4  ;;  %316 = vmatpush3.msra.mxu1 %v158_v8  ;;  %v147_v22 = vld [vmem:[#allocation5 + $0x10] sm:$0xff]  ;;  %v146_v23 = vld [vmem:[#allocation5 + $0x8] sm:$0xff]  ;;  %v145_v24 = vld [vmem:[#allocation5] sm:$0xff] }
  0x26   :  { %302 = vmatprep.subr.mxu0 %v400_v1  ;;  %317 = vmatprep.subr.mxu1 %v400_v1  ;;  %v267_v25 = vld [vmem:[%s492_s2] ss:$0 sm:$0xff] }
  0x27   :  { %303 = vmatpush3.msra.mxu0 %v59_v7  ;;  %318 = vmatpush3.msra.mxu1 %v157_v10  ;;  %v269_v30 = vld [vmem:[%s494_s4] ss:$0 sm:$0xff] }
  0x28   :  { %304 = vmatprep.subr.mxu0 %v400_v1  ;;  %319 = vmatprep.subr.mxu1 %v400_v1  ;;  %v270_v34 = vld [vmem:[%s495_s5] ss:$0 sm:$0xff] }
  0x29   :  { %305 = vmatpush3.msra.mxu0 %v58_v9  ;;  %320 = vmatpush3.msra.mxu1 %v156_v12  ;;  %v271_v38 = vld [vmem:[#allocation2] ss:$0 sm:$0xff] }
  0x2a   :  { %306 = vmatprep.subr.mxu0 %v400_v1  ;;  %321 = vmatprep.subr.mxu1 %v400_v1 }
  0x2b   :  { %307 = vmatpush3.msra.mxu0 %v57_v11  ;;  %322 = vmatpush3.msra.mxu1 %v155_v14 }
  0x2c   :  { %309 = vmatmul.mubr.msk.f32.vlgmr.msra.gmra.mxu0 %vm70_vm1, %v56_v13  ;;  %323 = vmatprep.subr.mxu1 %v400_v1 }
  0x2d   :  { %324 = vmatpush3.msra.mxu1 %v154_v15 }
  0x2e   :  { %325 = vmatprep.subr.mxu1 %v400_v1 }
  0x2f   :  { %326 = vmatpush3.msra.mxu1 %v153_v16 }
  0x30   :  { %327 = vmatprep.subr.mxu1 %v400_v1 }
  0x31   :  { %328 = vmatpush3.msra.mxu1 %v152_v17 }
  0x32   :  { %329 = vmatprep.subr.mxu1 %v400_v1 }
  0x33   :  { %330 = vmatpush3.msra.mxu1 %v151_v18 }
  0x34   :  { %331 = vmatprep.subr.mxu1 %v400_v1 }
  0x35   :  { %332 = vmatpush3.msra.mxu1 %v150_v19 }
  0x36   :  { %333 = vmatprep.subr.mxu1 %v400_v1 }
  0x37   :  { %334 = vmatpush3.msra.mxu1 %v149_v20 }
  0x38   :  { %335 = vmatprep.subr.mxu1 %v400_v1 }
  0x39   :  { %336 = vmatpush3.msra.mxu1 %v148_v21 }
  0x3a   :  { %337 = vmatprep.subr.mxu1 %v400_v1 }
  0x3b   :  { %338 = vmatpush3.msra.mxu1 %v147_v22 }
  0x3c   :  { %339 = vmatprep.subr.mxu1 %v400_v1 }
  0x3d   :  { %340 = vmatpush3.msra.mxu1 %v146_v23 }
  0x3e   :  { %341 = vmatprep.subr.mxu1 %v400_v1 }
  0x3f   :  { %342 = vmatpush3.msra.mxu1 %v145_v24 }
  0xec   :  { %v140_v26 = vpop.f32.mrf.mxu0 }
  0xed   :  { %v141_v27 = vadd.f32 %v267_v25, %v140_v26 }
  0xee   :  { %v310_v28 = vpop.f32.mrf.mxu0 }
  0xef   :  { %v144_v29 = vmax.f32 %v141_v27, 0.0 }
  0xf1   :  { %344 = vmatmul.mubr.f32.vlgmr.msra.gmra.mxu1 %v144_v29 }
 0x1b1   :  { %v234_v31 = vpop.f32.mrf.mxu1 }
 0x1b2   :  { %v235_v32 = vadd.f32 %v269_v30, %v234_v31 }
 0x1b3   :  { %v345_v33 = vpop.f32.mrf.mxu1 }
 0x1b4   :  { %v238_v35 = vmax.f32 %v235_v32, 0.0 }
 0x1b6   :  { %v246_v36 = vmul.f32 %v270_v34, %v238_v35 }
 0x1b8   :  { %v248_v37 = vsel %vm247_vm2, %v246_v36, 0.0 }
 0x1b9   :  { %249 = vadd.xlane.f32.xlu0 %v248_v37 }
 0x242   :  { %v250_v39 = vpop.xlane.xlu0 %249 }
 0x243   :  { %v258_v40 = vadd.f32 %v271_v38, %v250_v39 }
 0x245   :  { %260 = vst.msk [vmem:[%s497_s7] sm:$0x3] %vm259_vm3, %v258_v40 }
 0x246   :  { %265 = vsyncpa [#allocation4], 1 }
 0x247   :  { %266 = vsyncpa [#allocation6], 1 }

</bundles_post_ra>
